<compile_context>
chip_gen: v6e
topology: v6e:2x2x1
jax: 0.10.0
libtpu: 0.0.40
codegen_flags: <defaults>
</compile_context>

<pallas_src>
import jax
import jax.numpy as jnp
from jax.experimental import pallas as pl
from jax.experimental.pallas import tpu as pltpu

EMBEDDING_DIM = 32
HIDDEN_DIM = 32
VOCAB_SIZE = 50
TAGSET_SIZE = 8
SEQ_LEN = 8


def lstm_tagger_kernel(sent_ref, emb_ref, w_ih_ref, w_hh_ref, b_ref,
                       w_out_ref, b_out_ref, out_ref, x_s, h_s):
    """Gridless kernel; all operands resident in VMEM/SMEM.

    sent_ref : (seq,)   int32  SMEM   token ids
    emb_ref  : (V, E)   f32    VMEM   embedding table
    w_ih_ref : (E, 4H)  bf16   VMEM   lstm.weight_ih_l0, pre-transposed
    w_hh_ref : (H, 4H)  bf16   VMEM   lstm.weight_hh_l0, pre-transposed
    b_ref    : (1, 4H)  f32    VMEM   b_ih + b_hh
    w_out_ref: (H, T)   bf16   VMEM   hidden2tag.weight, pre-transposed
    b_out_ref: (1, T)   f32    VMEM   hidden2tag.bias
    out_ref  : (seq, T) f32    VMEM   log-softmax tag scores
    x_s      : (seq, E) f32    VMEM scratch  gathered embeddings
    h_s      : (seq, H) f32    VMEM scratch  per-step hidden states
    """
    H = HIDDEN_DIM
    seq = sent_ref.shape[0]

    # ---- fused embedding gather (static t, dynamic sublane index) ----------
    for t in range(seq):
        idx = sent_ref[t]
        x_s[pl.ds(t, 1), :] = emb_ref[pl.ds(idx, 1), :]

    # ---- hoisted input projection: one (seq,E)x(E,4H) matmul + fused bias --
    gates_x = jnp.dot(x_s[...].astype(jnp.bfloat16), w_ih_ref[...],
                      preferred_element_type=jnp.float32) + b_ref[...]

    # ---- unrolled recurrence: only h @ W_hh on the serial chain ------------
    w_hh = w_hh_ref[...]
    h = jnp.zeros((1, H), jnp.float32)
    c = jnp.zeros((1, H), jnp.float32)
    for t in range(seq):
        gates = gates_x[t:t + 1, :] + jnp.dot(
            h.astype(jnp.bfloat16), w_hh, preferred_element_type=jnp.float32)
        # PyTorch nn.LSTM gate order: i, f, g, o.
        # Full-row EUP (sigmoid/tanh over the whole (1,128) vreg), then lane slices.
        sig = jax.nn.sigmoid(gates)
        th = jnp.tanh(gates)
        i = sig[:, 0 * H:1 * H]
        f = sig[:, 1 * H:2 * H]
        g = th[:, 2 * H:3 * H]
        o = sig[:, 3 * H:4 * H]
        c = f * c + i * g
        h = o * jnp.tanh(c)
        h_s[pl.ds(t, 1), :] = h

    # ---- epilogue: hidden2tag + log_softmax, vectorized over all steps -----
    tag = jnp.dot(h_s[...].astype(jnp.bfloat16), w_out_ref[...],
                  preferred_element_type=jnp.float32) + b_out_ref[...]
    m = jnp.max(tag, axis=-1, keepdims=True)
    z = tag - m
    lse = jnp.log(jnp.sum(jnp.exp(z), axis=-1, keepdims=True))
    out_ref[...] = z - lse


def init_params(key):
    """Deterministic parameters matching the PyTorch module's shapes."""
    ks = jax.random.split(key, 7)
    H, E, V, T = HIDDEN_DIM, EMBEDDING_DIM, VOCAB_SIZE, TAGSET_SIZE
    s = 1.0 / jnp.sqrt(jnp.float32(H))
    u = lambda k, shp, sc: jax.random.uniform(k, shp, jnp.float32, -sc, sc)
    return {
        "embedding": jax.random.normal(ks[0], (V, E), jnp.float32),   # nn.Embedding
        "w_ih": u(ks[1], (4 * H, E), s),                              # lstm.weight_ih_l0
        "w_hh": u(ks[2], (4 * H, H), s),                              # lstm.weight_hh_l0
        "b_ih": u(ks[3], (4 * H,), s),                                # lstm.bias_ih_l0
        "b_hh": u(ks[4], (4 * H,), s),                                # lstm.bias_hh_l0
        "w_out": u(ks[5], (T, H), s),                                 # hidden2tag.weight
        "b_out": u(ks[6], (T,), s),                                   # hidden2tag.bias
    }


def prep_params(params):
    """One-time conversion to kernel-ready layout: pre-transposed weights,
    pre-fused biases, bf16 matmul operands (accumulation stays f32 in-kernel)."""
    return {
        "emb": params["embedding"].astype(jnp.float32),
        "w_ih_t": params["w_ih"].T.astype(jnp.bfloat16),
        "w_hh_t": params["w_hh"].T.astype(jnp.bfloat16),
        "b": (params["b_ih"] + params["b_hh"]).reshape(1, -1).astype(jnp.float32),
        "w_out_t": params["w_out"].T.astype(jnp.bfloat16),
        "b_out": params["b_out"].reshape(1, -1).astype(jnp.float32),
    }


@jax.jit
def lstm_tagger_forward(sentence, prepped):
    seq = sentence.shape[0]
    vmem = pl.BlockSpec(memory_space=pltpu.MemorySpace.VMEM)
    smem = pl.BlockSpec(memory_space=pltpu.MemorySpace.SMEM)
    return pl.pallas_call(
        lstm_tagger_kernel,
        out_shape=jax.ShapeDtypeStruct((seq, TAGSET_SIZE), jnp.float32),
        in_specs=[smem, vmem, vmem, vmem, vmem, vmem, vmem],
        out_specs=vmem,
        scratch_shapes=[pltpu.VMEM((seq, EMBEDDING_DIM), jnp.float32),
                        pltpu.VMEM((seq, HIDDEN_DIM), jnp.float32)],
    )(sentence, prepped["emb"], prepped["w_ih_t"], prepped["w_hh_t"],
      prepped["b"], prepped["w_out_t"], prepped["b_out"])


def reference_forward(sentence, params):
    """Plain-JAX f32 reference mirroring the PyTorch forward."""
    H = HIDDEN_DIM
    embeds = params["embedding"][sentence]
    w_ih_t = params["w_ih"].T
    w_hh_t = params["w_hh"].T
    b = (params["b_ih"] + params["b_hh"])[None, :]
    h = jnp.zeros((1, H), jnp.float32)
    c = jnp.zeros((1, H), jnp.float32)
    hs = []
    for t in range(sentence.shape[0]):
        gates = embeds[t:t + 1] @ w_ih_t + h @ w_hh_t + b
        i = jax.nn.sigmoid(gates[:, :H])
        f = jax.nn.sigmoid(gates[:, H:2 * H])
        g = jnp.tanh(gates[:, 2 * H:3 * H])
        o = jax.nn.sigmoid(gates[:, 3 * H:])
        c = f * c + i * g
        h = o * jnp.tanh(c)
        hs.append(h)
    hs = jnp.concatenate(hs, axis=0)
    tag = hs @ params["w_out"].T + params["b_out"][None, :]
    return jax.nn.log_softmax(tag, axis=-1)


if __name__ == "__main__":
    key = jax.random.PRNGKey(0)
    pkey, skey = jax.random.split(key)
    params = init_params(pkey)
    prepped = prep_params(params)
    sentence = jax.random.randint(skey, (SEQ_LEN,), 0, VOCAB_SIZE, dtype=jnp.int32)

    tag_scores = lstm_tagger_forward(sentence, prepped)
    jax.block_until_ready(tag_scores)

    assert tag_scores.shape == (SEQ_LEN, TAGSET_SIZE)
    # rows of log_softmax must exp-sum to 1
    assert jnp.allclose(jnp.exp(tag_scores).sum(axis=1), 1.0, atol=1e-4)
    # matches the plain-JAX f32 reference (bf16 matmul operands -> loose tolerance)
    ref = reference_forward(sentence, params)
    assert jnp.max(jnp.abs(tag_scores - ref)) < 1e-1
    print("KERNEL_OK")
</pallas_src>

<mosaic_0001>
module attributes {stable_mosaic.version = 11 : i64} {
  func.func @lstm_tagger_kernel(%arg0: memref<8xi32, #tpu.memory_space<smem>>, %arg1: memref<50x32xf32, #tpu.memory_space<vmem>>, %arg2: memref<32x128xbf16, #tpu.memory_space<vmem>>, %arg3: memref<32x128xbf16, #tpu.memory_space<vmem>>, %arg4: memref<1x128xf32, #tpu.memory_space<vmem>>, %arg5: memref<32x8xbf16, #tpu.memory_space<vmem>>, %arg6: memref<1x8xf32, #tpu.memory_space<vmem>>, %arg7: memref<8x8xf32, #tpu.memory_space<vmem>>, %arg8: memref<8x32xf32, #tpu.memory_space<vmem>>, %arg9: memref<8x32xf32, #tpu.memory_space<vmem>>) attributes {dimension_semantics = [], scalar_prefetch = 0 : i64, scratch_operands = 2 : i64, tpu.core_type = #tpu.core_type<tc>} {
    %c0 = arith.constant 0 : index
    %0 = memref.load %arg0[%c0] : memref<8xi32, #tpu.memory_space<smem>>
    %1 = arith.index_cast %0 : i32 to index
    %c0_0 = arith.constant 0 : index
    %2 = vector.load %arg1[%1, %c0_0] : memref<50x32xf32, #tpu.memory_space<vmem>>, vector<1x32xf32>
    %c0_1 = arith.constant 0 : index
    %c0_2 = arith.constant 0 : index
    %3 = vector.load %arg8[%c0_1, %c0_2] : memref<8x32xf32, #tpu.memory_space<vmem>>, vector<1x32xf32>
    tpu.vector_store %arg8[%c0_1, %c0_2], %2 {strides = array<i32>} : memref<8x32xf32, #tpu.memory_space<vmem>>, vector<1x32xf32>,
    %c1 = arith.constant 1 : index
    %4 = memref.load %arg0[%c1] : memref<8xi32, #tpu.memory_space<smem>>
    %5 = arith.index_cast %4 : i32 to index
    %c0_3 = arith.constant 0 : index
    %6 = vector.load %arg1[%5, %c0_3] : memref<50x32xf32, #tpu.memory_space<vmem>>, vector<1x32xf32>
    %c1_4 = arith.constant 1 : index
    %c0_5 = arith.constant 0 : index
    %7 = vector.load %arg8[%c1_4, %c0_5] : memref<8x32xf32, #tpu.memory_space<vmem>>, vector<1x32xf32>
    tpu.vector_store %arg8[%c1_4, %c0_5], %6 {strides = array<i32>} : memref<8x32xf32, #tpu.memory_space<vmem>>, vector<1x32xf32>,
    %c2 = arith.constant 2 : index
    %8 = memref.load %arg0[%c2] : memref<8xi32, #tpu.memory_space<smem>>
    %9 = arith.index_cast %8 : i32 to index
    %c0_6 = arith.constant 0 : index
    %10 = vector.load %arg1[%9, %c0_6] : memref<50x32xf32, #tpu.memory_space<vmem>>, vector<1x32xf32>
    %c2_7 = arith.constant 2 : index
    %c0_8 = arith.constant 0 : index
    %11 = vector.load %arg8[%c2_7, %c0_8] : memref<8x32xf32, #tpu.memory_space<vmem>>, vector<1x32xf32>
    tpu.vector_store %arg8[%c2_7, %c0_8], %10 {strides = array<i32>} : memref<8x32xf32, #tpu.memory_space<vmem>>, vector<1x32xf32>,
    %c3 = arith.constant 3 : index
    %12 = memref.load %arg0[%c3] : memref<8xi32, #tpu.memory_space<smem>>
    %13 = arith.index_cast %12 : i32 to index
    %c0_9 = arith.constant 0 : index
    %14 = vector.load %arg1[%13, %c0_9] : memref<50x32xf32, #tpu.memory_space<vmem>>, vector<1x32xf32>
    %c3_10 = arith.constant 3 : index
    %c0_11 = arith.constant 0 : index
    %15 = vector.load %arg8[%c3_10, %c0_11] : memref<8x32xf32, #tpu.memory_space<vmem>>, vector<1x32xf32>
    tpu.vector_store %arg8[%c3_10, %c0_11], %14 {strides = array<i32>} : memref<8x32xf32, #tpu.memory_space<vmem>>, vector<1x32xf32>,
    %c4 = arith.constant 4 : index
    %16 = memref.load %arg0[%c4] : memref<8xi32, #tpu.memory_space<smem>>
    %17 = arith.index_cast %16 : i32 to index
    %c0_12 = arith.constant 0 : index
    %18 = vector.load %arg1[%17, %c0_12] : memref<50x32xf32, #tpu.memory_space<vmem>>, vector<1x32xf32>
    %c4_13 = arith.constant 4 : index
    %c0_14 = arith.constant 0 : index
    %19 = vector.load %arg8[%c4_13, %c0_14] : memref<8x32xf32, #tpu.memory_space<vmem>>, vector<1x32xf32>
    tpu.vector_store %arg8[%c4_13, %c0_14], %18 {strides = array<i32>} : memref<8x32xf32, #tpu.memory_space<vmem>>, vector<1x32xf32>,
    %c5 = arith.constant 5 : index
    %20 = memref.load %arg0[%c5] : memref<8xi32, #tpu.memory_space<smem>>
    %21 = arith.index_cast %20 : i32 to index
    %c0_15 = arith.constant 0 : index
    %22 = vector.load %arg1[%21, %c0_15] : memref<50x32xf32, #tpu.memory_space<vmem>>, vector<1x32xf32>
    %c5_16 = arith.constant 5 : index
    %c0_17 = arith.constant 0 : index
    %23 = vector.load %arg8[%c5_16, %c0_17] : memref<8x32xf32, #tpu.memory_space<vmem>>, vector<1x32xf32>
    tpu.vector_store %arg8[%c5_16, %c0_17], %22 {strides = array<i32>} : memref<8x32xf32, #tpu.memory_space<vmem>>, vector<1x32xf32>,
    %c6 = arith.constant 6 : index
    %24 = memref.load %arg0[%c6] : memref<8xi32, #tpu.memory_space<smem>>
    %25 = arith.index_cast %24 : i32 to index
    %c0_18 = arith.constant 0 : index
    %26 = vector.load %arg1[%25, %c0_18] : memref<50x32xf32, #tpu.memory_space<vmem>>, vector<1x32xf32>
    %c6_19 = arith.constant 6 : index
    %c0_20 = arith.constant 0 : index
    %27 = vector.load %arg8[%c6_19, %c0_20] : memref<8x32xf32, #tpu.memory_space<vmem>>, vector<1x32xf32>
    tpu.vector_store %arg8[%c6_19, %c0_20], %26 {strides = array<i32>} : memref<8x32xf32, #tpu.memory_space<vmem>>, vector<1x32xf32>,
    %c7 = arith.constant 7 : index
    %28 = memref.load %arg0[%c7] : memref<8xi32, #tpu.memory_space<smem>>
    %29 = arith.index_cast %28 : i32 to index
    %c0_21 = arith.constant 0 : index
    %30 = vector.load %arg1[%29, %c0_21] : memref<50x32xf32, #tpu.memory_space<vmem>>, vector<1x32xf32>
    %c7_22 = arith.constant 7 : index
    %c0_23 = arith.constant 0 : index
    %31 = vector.load %arg8[%c7_22, %c0_23] : memref<8x32xf32, #tpu.memory_space<vmem>>, vector<1x32xf32>
    tpu.vector_store %arg8[%c7_22, %c0_23], %30 {strides = array<i32>} : memref<8x32xf32, #tpu.memory_space<vmem>>, vector<1x32xf32>,
    %c0_24 = arith.constant 0 : index
    %c0_25 = arith.constant 0 : index
    %32 = vector.load %arg8[%c0_24, %c0_25] : memref<8x32xf32, #tpu.memory_space<vmem>>, vector<8x32xf32>
    %33 = arith.truncf %32 : vector<8x32xf32> to vector<8x32xbf16>
    %c0_26 = arith.constant 0 : index
    %c0_27 = arith.constant 0 : index
    %34 = vector.load %arg2[%c0_26, %c0_27] : memref<32x128xbf16, #tpu.memory_space<vmem>>, vector<32x128xbf16>
    %cst = arith.constant dense<0.000000e+00> : vector<8x128xf32>
    %35 = tpu.matmul %33, %34, %cst {dimension_numbers = #tpu.dot_dimension_numbers<[1], [0], [0], [1], [0, 0, 1, 1], [], []>} : vector<8x32xbf16>, vector<32x128xbf16>, vector<8x128xf32> -> vector<8x128xf32>
    %c0_28 = arith.constant 0 : index
    %c0_29 = arith.constant 0 : index
    %36 = vector.load %arg4[%c0_28, %c0_29] : memref<1x128xf32, #tpu.memory_space<vmem>>, vector<1x128xf32>
    %37 = vector.broadcast %36 : vector<1x128xf32> to vector<8x128xf32>
    %38 = arith.addf %35, %37 : vector<8x128xf32>
    %c0_30 = arith.constant 0 : index
    %c0_31 = arith.constant 0 : index
    %39 = vector.load %arg3[%c0_30, %c0_31] : memref<32x128xbf16, #tpu.memory_space<vmem>>, vector<32x128xbf16>
    %cst_32 = arith.constant 0.000000e+00 : f32
    %40 = vector.broadcast %cst_32 : f32 to vector<1x32xf32>
    %cst_33 = arith.constant 0.000000e+00 : f32
    %41 = vector.broadcast %cst_33 : f32 to vector<1x32xf32>
    %42 = vector.extract_strided_slice %38 {offsets = [0, 0], sizes = [1, 128], strides = [1, 1]} : vector<8x128xf32> to vector<1x128xf32>
    %43 = arith.truncf %40 : vector<1x32xf32> to vector<1x32xbf16>
    %cst_34 = arith.constant dense<0.000000e+00> : vector<1x128xf32>
    %44 = tpu.matmul %43, %39, %cst_34 {dimension_numbers = #tpu.dot_dimension_numbers<[1], [0], [0], [1], [0, 0, 1, 1], [], []>} : vector<1x32xbf16>, vector<32x128xbf16>, vector<1x128xf32> -> vector<1x128xf32>
    %45 = arith.addf %42, %44 : vector<1x128xf32>
    %46 = arith.negf %45 : vector<1x128xf32>
    %47 = math.exp %46 : vector<1x128xf32>
    %cst_35 = arith.constant 1.000000e+00 : f32
    %48 = vector.broadcast %cst_35 : f32 to vector<1x128xf32>
    %49 = arith.addf %48, %47 : vector<1x128xf32>
    %50 = arith.divf %48, %49 : vector<1x128xf32>
    %51 = math.tanh %45 : vector<1x128xf32>
    %52 = vector.extract_strided_slice %50 {offsets = [0, 0], sizes = [1, 32], strides = [1, 1]} : vector<1x128xf32> to vector<1x32xf32>
    %53 = vector.extract_strided_slice %50 {offsets = [0, 32], sizes = [1, 32], strides = [1, 1]} : vector<1x128xf32> to vector<1x32xf32>
    %54 = vector.extract_strided_slice %51 {offsets = [0, 64], sizes = [1, 32], strides = [1, 1]} : vector<1x128xf32> to vector<1x32xf32>
    %55 = vector.extract_strided_slice %50 {offsets = [0, 96], sizes = [1, 32], strides = [1, 1]} : vector<1x128xf32> to vector<1x32xf32>
    %56 = arith.mulf %53, %41 : vector<1x32xf32>
    %57 = arith.mulf %52, %54 : vector<1x32xf32>
    %58 = arith.addf %56, %57 : vector<1x32xf32>
    %59 = math.tanh %58 : vector<1x32xf32>
    %60 = arith.mulf %55, %59 : vector<1x32xf32>
    %c0_36 = arith.constant 0 : index
    %c0_37 = arith.constant 0 : index
    %61 = vector.load %arg9[%c0_36, %c0_37] : memref<8x32xf32, #tpu.memory_space<vmem>>, vector<1x32xf32>
    tpu.vector_store %arg9[%c0_36, %c0_37], %60 {strides = array<i32>} : memref<8x32xf32, #tpu.memory_space<vmem>>, vector<1x32xf32>,
    %62 = vector.extract_strided_slice %38 {offsets = [1, 0], sizes = [1, 128], strides = [1, 1]} : vector<8x128xf32> to vector<1x128xf32>
    %63 = arith.truncf %60 : vector<1x32xf32> to vector<1x32xbf16>
    %cst_38 = arith.constant dense<0.000000e+00> : vector<1x128xf32>
    %64 = tpu.matmul %63, %39, %cst_38 {dimension_numbers = #tpu.dot_dimension_numbers<[1], [0], [0], [1], [0, 0, 1, 1], [], []>} : vector<1x32xbf16>, vector<32x128xbf16>, vector<1x128xf32> -> vector<1x128xf32>
    %65 = arith.addf %62, %64 : vector<1x128xf32>
    %66 = arith.negf %65 : vector<1x128xf32>
    %67 = math.exp %66 : vector<1x128xf32>
    %cst_39 = arith.constant 1.000000e+00 : f32
    %68 = vector.broadcast %cst_39 : f32 to vector<1x128xf32>
    %69 = arith.addf %68, %67 : vector<1x128xf32>
    %70 = arith.divf %68, %69 : vector<1x128xf32>
    %71 = math.tanh %65 : vector<1x128xf32>
    %72 = vector.extract_strided_slice %70 {offsets = [0, 0], sizes = [1, 32], strides = [1, 1]} : vector<1x128xf32> to vector<1x32xf32>
    %73 = vector.extract_strided_slice %70 {offsets = [0, 32], sizes = [1, 32], strides = [1, 1]} : vector<1x128xf32> to vector<1x32xf32>
    %74 = vector.extract_strided_slice %71 {offsets = [0, 64], sizes = [1, 32], strides = [1, 1]} : vector<1x128xf32> to vector<1x32xf32>
    %75 = vector.extract_strided_slice %70 {offsets = [0, 96], sizes = [1, 32], strides = [1, 1]} : vector<1x128xf32> to vector<1x32xf32>
    %76 = arith.mulf %73, %58 : vector<1x32xf32>
    %77 = arith.mulf %72, %74 : vector<1x32xf32>
    %78 = arith.addf %76, %77 : vector<1x32xf32>
    %79 = math.tanh %78 : vector<1x32xf32>
    %80 = arith.mulf %75, %79 : vector<1x32xf32>
    %c1_40 = arith.constant 1 : index
    %c0_41 = arith.constant 0 : index
    %81 = vector.load %arg9[%c1_40, %c0_41] : memref<8x32xf32, #tpu.memory_space<vmem>>, vector<1x32xf32>
    tpu.vector_store %arg9[%c1_40, %c0_41], %80 {strides = array<i32>} : memref<8x32xf32, #tpu.memory_space<vmem>>, vector<1x32xf32>,
    %82 = vector.extract_strided_slice %38 {offsets = [2, 0], sizes = [1, 128], strides = [1, 1]} : vector<8x128xf32> to vector<1x128xf32>
    %83 = arith.truncf %80 : vector<1x32xf32> to vector<1x32xbf16>
    %cst_42 = arith.constant dense<0.000000e+00> : vector<1x128xf32>
    %84 = tpu.matmul %83, %39, %cst_42 {dimension_numbers = #tpu.dot_dimension_numbers<[1], [0], [0], [1], [0, 0, 1, 1], [], []>} : vector<1x32xbf16>, vector<32x128xbf16>, vector<1x128xf32> -> vector<1x128xf32>
    %85 = arith.addf %82, %84 : vector<1x128xf32>
    %86 = arith.negf %85 : vector<1x128xf32>
    %87 = math.exp %86 : vector<1x128xf32>
    %cst_43 = arith.constant 1.000000e+00 : f32
    %88 = vector.broadcast %cst_43 : f32 to vector<1x128xf32>
    %89 = arith.addf %88, %87 : vector<1x128xf32>
    %90 = arith.divf %88, %89 : vector<1x128xf32>
    %91 = math.tanh %85 : vector<1x128xf32>
    %92 = vector.extract_strided_slice %90 {offsets = [0, 0], sizes = [1, 32], strides = [1, 1]} : vector<1x128xf32> to vector<1x32xf32>
    %93 = vector.extract_strided_slice %90 {offsets = [0, 32], sizes = [1, 32], strides = [1, 1]} : vector<1x128xf32> to vector<1x32xf32>
    %94 = vector.extract_strided_slice %91 {offsets = [0, 64], sizes = [1, 32], strides = [1, 1]} : vector<1x128xf32> to vector<1x32xf32>
    %95 = vector.extract_strided_slice %90 {offsets = [0, 96], sizes = [1, 32], strides = [1, 1]} : vector<1x128xf32> to vector<1x32xf32>
    %96 = arith.mulf %93, %78 : vector<1x32xf32>
    %97 = arith.mulf %92, %94 : vector<1x32xf32>
    %98 = arith.addf %96, %97 : vector<1x32xf32>
    %99 = math.tanh %98 : vector<1x32xf32>
    %100 = arith.mulf %95, %99 : vector<1x32xf32>
    %c2_44 = arith.constant 2 : index
    %c0_45 = arith.constant 0 : index
    %101 = vector.load %arg9[%c2_44, %c0_45] : memref<8x32xf32, #tpu.memory_space<vmem>>, vector<1x32xf32>
    tpu.vector_store %arg9[%c2_44, %c0_45], %100 {strides = array<i32>} : memref<8x32xf32, #tpu.memory_space<vmem>>, vector<1x32xf32>,
    %102 = vector.extract_strided_slice %38 {offsets = [3, 0], sizes = [1, 128], strides = [1, 1]} : vector<8x128xf32> to vector<1x128xf32>
    %103 = arith.truncf %100 : vector<1x32xf32> to vector<1x32xbf16>
    %cst_46 = arith.constant dense<0.000000e+00> : vector<1x128xf32>
    %104 = tpu.matmul %103, %39, %cst_46 {dimension_numbers = #tpu.dot_dimension_numbers<[1], [0], [0], [1], [0, 0, 1, 1], [], []>} : vector<1x32xbf16>, vector<32x128xbf16>, vector<1x128xf32> -> vector<1x128xf32>
    %105 = arith.addf %102, %104 : vector<1x128xf32>
    %106 = arith.negf %105 : vector<1x128xf32>
    %107 = math.exp %106 : vector<1x128xf32>
    %cst_47 = arith.constant 1.000000e+00 : f32
    %108 = vector.broadcast %cst_47 : f32 to vector<1x128xf32>
    %109 = arith.addf %108, %107 : vector<1x128xf32>
    %110 = arith.divf %108, %109 : vector<1x128xf32>
    %111 = math.tanh %105 : vector<1x128xf32>
    %112 = vector.extract_strided_slice %110 {offsets = [0, 0], sizes = [1, 32], strides = [1, 1]} : vector<1x128xf32> to vector<1x32xf32>
    %113 = vector.extract_strided_slice %110 {offsets = [0, 32], sizes = [1, 32], strides = [1, 1]} : vector<1x128xf32> to vector<1x32xf32>
    %114 = vector.extract_strided_slice %111 {offsets = [0, 64], sizes = [1, 32], strides = [1, 1]} : vector<1x128xf32> to vector<1x32xf32>
    %115 = vector.extract_strided_slice %110 {offsets = [0, 96], sizes = [1, 32], strides = [1, 1]} : vector<1x128xf32> to vector<1x32xf32>
    %116 = arith.mulf %113, %98 : vector<1x32xf32>
    %117 = arith.mulf %112, %114 : vector<1x32xf32>
    %118 = arith.addf %116, %117 : vector<1x32xf32>
    %119 = math.tanh %118 : vector<1x32xf32>
    %120 = arith.mulf %115, %119 : vector<1x32xf32>
    %c3_48 = arith.constant 3 : index
    %c0_49 = arith.constant 0 : index
    %121 = vector.load %arg9[%c3_48, %c0_49] : memref<8x32xf32, #tpu.memory_space<vmem>>, vector<1x32xf32>
    tpu.vector_store %arg9[%c3_48, %c0_49], %120 {strides = array<i32>} : memref<8x32xf32, #tpu.memory_space<vmem>>, vector<1x32xf32>,
    %122 = vector.extract_strided_slice %38 {offsets = [4, 0], sizes = [1, 128], strides = [1, 1]} : vector<8x128xf32> to vector<1x128xf32>
    %123 = arith.truncf %120 : vector<1x32xf32> to vector<1x32xbf16>
    %cst_50 = arith.constant dense<0.000000e+00> : vector<1x128xf32>
    %124 = tpu.matmul %123, %39, %cst_50 {dimension_numbers = #tpu.dot_dimension_numbers<[1], [0], [0], [1], [0, 0, 1, 1], [], []>} : vector<1x32xbf16>, vector<32x128xbf16>, vector<1x128xf32> -> vector<1x128xf32>
    %125 = arith.addf %122, %124 : vector<1x128xf32>
    %126 = arith.negf %125 : vector<1x128xf32>
    %127 = math.exp %126 : vector<1x128xf32>
    %cst_51 = arith.constant 1.000000e+00 : f32
    %128 = vector.broadcast %cst_51 : f32 to vector<1x128xf32>
    %129 = arith.addf %128, %127 : vector<1x128xf32>
    %130 = arith.divf %128, %129 : vector<1x128xf32>
    %131 = math.tanh %125 : vector<1x128xf32>
    %132 = vector.extract_strided_slice %130 {offsets = [0, 0], sizes = [1, 32], strides = [1, 1]} : vector<1x128xf32> to vector<1x32xf32>
    %133 = vector.extract_strided_slice %130 {offsets = [0, 32], sizes = [1, 32], strides = [1, 1]} : vector<1x128xf32> to vector<1x32xf32>
    %134 = vector.extract_strided_slice %131 {offsets = [0, 64], sizes = [1, 32], strides = [1, 1]} : vector<1x128xf32> to vector<1x32xf32>
    %135 = vector.extract_strided_slice %130 {offsets = [0, 96], sizes = [1, 32], strides = [1, 1]} : vector<1x128xf32> to vector<1x32xf32>
    %136 = arith.mulf %133, %118 : vector<1x32xf32>
    %137 = arith.mulf %132, %134 : vector<1x32xf32>
    %138 = arith.addf %136, %137 : vector<1x32xf32>
    %139 = math.tanh %138 : vector<1x32xf32>
    %140 = arith.mulf %135, %139 : vector<1x32xf32>
    %c4_52 = arith.constant 4 : index
    %c0_53 = arith.constant 0 : index
    %141 = vector.load %arg9[%c4_52, %c0_53] : memref<8x32xf32, #tpu.memory_space<vmem>>, vector<1x32xf32>
    tpu.vector_store %arg9[%c4_52, %c0_53], %140 {strides = array<i32>} : memref<8x32xf32, #tpu.memory_space<vmem>>, vector<1x32xf32>,
    %142 = vector.extract_strided_slice %38 {offsets = [5, 0], sizes = [1, 128], strides = [1, 1]} : vector<8x128xf32> to vector<1x128xf32>
    %143 = arith.truncf %140 : vector<1x32xf32> to vector<1x32xbf16>
    %cst_54 = arith.constant dense<0.000000e+00> : vector<1x128xf32>
    %144 = tpu.matmul %143, %39, %cst_54 {dimension_numbers = #tpu.dot_dimension_numbers<[1], [0], [0], [1], [0, 0, 1, 1], [], []>} : vector<1x32xbf16>, vector<32x128xbf16>, vector<1x128xf32> -> vector<1x128xf32>
    %145 = arith.addf %142, %144 : vector<1x128xf32>
    %146 = arith.negf %145 : vector<1x128xf32>
    %147 = math.exp %146 : vector<1x128xf32>
    %cst_55 = arith.constant 1.000000e+00 : f32
    %148 = vector.broadcast %cst_55 : f32 to vector<1x128xf32>
    %149 = arith.addf %148, %147 : vector<1x128xf32>
    %150 = arith.divf %148, %149 : vector<1x128xf32>
    %151 = math.tanh %145 : vector<1x128xf32>
    %152 = vector.extract_strided_slice %150 {offsets = [0, 0], sizes = [1, 32], strides = [1, 1]} : vector<1x128xf32> to vector<1x32xf32>
    %153 = vector.extract_strided_slice %150 {offsets = [0, 32], sizes = [1, 32], strides = [1, 1]} : vector<1x128xf32> to vector<1x32xf32>
    %154 = vector.extract_strided_slice %151 {offsets = [0, 64], sizes = [1, 32], strides = [1, 1]} : vector<1x128xf32> to vector<1x32xf32>
    %155 = vector.extract_strided_slice %150 {offsets = [0, 96], sizes = [1, 32], strides = [1, 1]} : vector<1x128xf32> to vector<1x32xf32>
    %156 = arith.mulf %153, %138 : vector<1x32xf32>
    %157 = arith.mulf %152, %154 : vector<1x32xf32>
    %158 = arith.addf %156, %157 : vector<1x32xf32>
    %159 = math.tanh %158 : vector<1x32xf32>
    %160 = arith.mulf %155, %159 : vector<1x32xf32>
    %c5_56 = arith.constant 5 : index
    %c0_57 = arith.constant 0 : index
    %161 = vector.load %arg9[%c5_56, %c0_57] : memref<8x32xf32, #tpu.memory_space<vmem>>, vector<1x32xf32>
    tpu.vector_store %arg9[%c5_56, %c0_57], %160 {strides = array<i32>} : memref<8x32xf32, #tpu.memory_space<vmem>>, vector<1x32xf32>,
    %162 = vector.extract_strided_slice %38 {offsets = [6, 0], sizes = [1, 128], strides = [1, 1]} : vector<8x128xf32> to vector<1x128xf32>
    %163 = arith.truncf %160 : vector<1x32xf32> to vector<1x32xbf16>
    %cst_58 = arith.constant dense<0.000000e+00> : vector<1x128xf32>
    %164 = tpu.matmul %163, %39, %cst_58 {dimension_numbers = #tpu.dot_dimension_numbers<[1], [0], [0], [1], [0, 0, 1, 1], [], []>} : vector<1x32xbf16>, vector<32x128xbf16>, vector<1x128xf32> -> vector<1x128xf32>
    %165 = arith.addf %162, %164 : vector<1x128xf32>
    %166 = arith.negf %165 : vector<1x128xf32>
    %167 = math.exp %166 : vector<1x128xf32>
    %cst_59 = arith.constant 1.000000e+00 : f32
    %168 = vector.broadcast %cst_59 : f32 to vector<1x128xf32>
    %169 = arith.addf %168, %167 : vector<1x128xf32>
    %170 = arith.divf %168, %169 : vector<1x128xf32>
    %171 = math.tanh %165 : vector<1x128xf32>
    %172 = vector.extract_strided_slice %170 {offsets = [0, 0], sizes = [1, 32], strides = [1, 1]} : vector<1x128xf32> to vector<1x32xf32>
    %173 = vector.extract_strided_slice %170 {offsets = [0, 32], sizes = [1, 32], strides = [1, 1]} : vector<1x128xf32> to vector<1x32xf32>
    %174 = vector.extract_strided_slice %171 {offsets = [0, 64], sizes = [1, 32], strides = [1, 1]} : vector<1x128xf32> to vector<1x32xf32>
    %175 = vector.extract_strided_slice %170 {offsets = [0, 96], sizes = [1, 32], strides = [1, 1]} : vector<1x128xf32> to vector<1x32xf32>
    %176 = arith.mulf %173, %158 : vector<1x32xf32>
    %177 = arith.mulf %172, %174 : vector<1x32xf32>
    %178 = arith.addf %176, %177 : vector<1x32xf32>
    %179 = math.tanh %178 : vector<1x32xf32>
    %180 = arith.mulf %175, %179 : vector<1x32xf32>
    %c6_60 = arith.constant 6 : index
    %c0_61 = arith.constant 0 : index
    %181 = vector.load %arg9[%c6_60, %c0_61] : memref<8x32xf32, #tpu.memory_space<vmem>>, vector<1x32xf32>
    tpu.vector_store %arg9[%c6_60, %c0_61], %180 {strides = array<i32>} : memref<8x32xf32, #tpu.memory_space<vmem>>, vector<1x32xf32>,
    %182 = vector.extract_strided_slice %38 {offsets = [7, 0], sizes = [1, 128], strides = [1, 1]} : vector<8x128xf32> to vector<1x128xf32>
    %183 = arith.truncf %180 : vector<1x32xf32> to vector<1x32xbf16>
    %cst_62 = arith.constant dense<0.000000e+00> : vector<1x128xf32>
    %184 = tpu.matmul %183, %39, %cst_62 {dimension_numbers = #tpu.dot_dimension_numbers<[1], [0], [0], [1], [0, 0, 1, 1], [], []>} : vector<1x32xbf16>, vector<32x128xbf16>, vector<1x128xf32> -> vector<1x128xf32>
    %185 = arith.addf %182, %184 : vector<1x128xf32>
    %186 = arith.negf %185 : vector<1x128xf32>
    %187 = math.exp %186 : vector<1x128xf32>
    %cst_63 = arith.constant 1.000000e+00 : f32
    %188 = vector.broadcast %cst_63 : f32 to vector<1x128xf32>
    %189 = arith.addf %188, %187 : vector<1x128xf32>
    %190 = arith.divf %188, %189 : vector<1x128xf32>
    %191 = math.tanh %185 : vector<1x128xf32>
    %192 = vector.extract_strided_slice %190 {offsets = [0, 0], sizes = [1, 32], strides = [1, 1]} : vector<1x128xf32> to vector<1x32xf32>
    %193 = vector.extract_strided_slice %190 {offsets = [0, 32], sizes = [1, 32], strides = [1, 1]} : vector<1x128xf32> to vector<1x32xf32>
    %194 = vector.extract_strided_slice %191 {offsets = [0, 64], sizes = [1, 32], strides = [1, 1]} : vector<1x128xf32> to vector<1x32xf32>
    %195 = vector.extract_strided_slice %190 {offsets = [0, 96], sizes = [1, 32], strides = [1, 1]} : vector<1x128xf32> to vector<1x32xf32>
    %196 = arith.mulf %193, %178 : vector<1x32xf32>
    %197 = arith.mulf %192, %194 : vector<1x32xf32>
    %198 = arith.addf %196, %197 : vector<1x32xf32>
    %199 = math.tanh %198 : vector<1x32xf32>
    %200 = arith.mulf %195, %199 : vector<1x32xf32>
    %c7_64 = arith.constant 7 : index
    %c0_65 = arith.constant 0 : index
    %201 = vector.load %arg9[%c7_64, %c0_65] : memref<8x32xf32, #tpu.memory_space<vmem>>, vector<1x32xf32>
    tpu.vector_store %arg9[%c7_64, %c0_65], %200 {strides = array<i32>} : memref<8x32xf32, #tpu.memory_space<vmem>>, vector<1x32xf32>,
    %c0_66 = arith.constant 0 : index
    %c0_67 = arith.constant 0 : index
    %202 = vector.load %arg9[%c0_66, %c0_67] : memref<8x32xf32, #tpu.memory_space<vmem>>, vector<8x32xf32>
    %203 = arith.truncf %202 : vector<8x32xf32> to vector<8x32xbf16>
    %c0_68 = arith.constant 0 : index
    %c0_69 = arith.constant 0 : index
    %204 = vector.load %arg5[%c0_68, %c0_69] : memref<32x8xbf16, #tpu.memory_space<vmem>>, vector<32x8xbf16>
    %cst_70 = arith.constant dense<0.000000e+00> : vector<8x8xf32>
    %205 = tpu.matmul %203, %204, %cst_70 {dimension_numbers = #tpu.dot_dimension_numbers<[1], [0], [0], [1], [0, 0, 1, 1], [], []>} : vector<8x32xbf16>, vector<32x8xbf16>, vector<8x8xf32> -> vector<8x8xf32>
    %c0_71 = arith.constant 0 : index
    %c0_72 = arith.constant 0 : index
    %206 = vector.load %arg6[%c0_71, %c0_72] : memref<1x8xf32, #tpu.memory_space<vmem>>, vector<1x8xf32>
    %207 = vector.broadcast %206 : vector<1x8xf32> to vector<8x8xf32>
    %208 = arith.addf %205, %207 : vector<8x8xf32>
    %cst_73 = arith.constant dense<0xFF800000> : vector<8xf32>
    %209 = vector.multi_reduction <maximumf>, %208, %cst_73 [1] : vector<8x8xf32> to vector<8xf32>
    %210 = vector.shape_cast %209 : vector<8xf32> to vector<8x1xf32>
    %211 = vector.broadcast %210 : vector<8x1xf32> to vector<8x8xf32>
    %212 = arith.subf %208, %211 : vector<8x8xf32>
    %213 = math.exp %212 : vector<8x8xf32>
    %cst_74 = arith.constant dense<0.000000e+00> : vector<8xf32>
    %214 = vector.multi_reduction <add>, %213, %cst_74 [1] : vector<8x8xf32> to vector<8xf32>
    %215 = vector.shape_cast %214 : vector<8xf32> to vector<8x1xf32>
    %216 = math.log %215 : vector<8x1xf32>
    %217 = vector.broadcast %216 : vector<8x1xf32> to vector<8x8xf32>
    %218 = arith.subf %212, %217 : vector<8x8xf32>
    %c0_75 = arith.constant 0 : index
    %c0_76 = arith.constant 0 : index
    %219 = vector.load %arg7[%c0_75, %c0_76] : memref<8x8xf32, #tpu.memory_space<vmem>>, vector<8x8xf32>
    tpu.vector_store %arg7[%c0_75, %c0_76], %218 {strides = array<i32>} : memref<8x8xf32, #tpu.memory_space<vmem>>, vector<8x8xf32>,
    return
  }
}

</mosaic_0001>

<bundles_post_ra>
// kernel: lstm_tagger_forward.1
= control target key start
LH: loop header
LB: loop body
LE: loop exit
PB: predicated region body
PF: predicated region fallthrough
CT: control target
= control target key end

     0   :  { %12 = vsyncpa [#allocation6], 0  ;;  %s1456_s0 = inlined_call_operand.vmem [shape: s32[8], index: 0, kind: input, shape index: {}]   ;;  %s1457_s1 = inlined_call_operand.vmem [shape: f32[50,32], index: 1, kind: input, shape index: {}]   ;;  %s1458_s2 = inlined_call_operand.vmem [shape: bf16[32,128], index: 2, kind: input, shape index: {}]   ;;  %s1459_s3 = inlined_call_operand.vmem [shape: bf16[32,128], index: 3, kind: input, shape index: {}]   ;;  %s1460_s4 = inlined_call_operand.vmem [shape: f32[1,128], index: 4, kind: input, shape index: {}]   ;;  %s1461_s5 = inlined_call_operand.vmem [shape: bf16[32,8], index: 5, kind: input, shape index: {}]   ;;  %s1462_s6 = inlined_call_operand.vmem [shape: f32[1,8], index: 6, kind: input, shape index: {}]   ;;  %s1463_s7 = inlined_call_operand.hbm [shape: f32[8,8], index: 7, kind: output, shape index: {}]  }
   0x1   :  { %13 = vsyncpa [#allocation5], 0  ;;  %s20_s26 = sshll.u32 %s1456_s0, 4  ;;  %s21_s26 = int_to_ptr.vmem [resolvable:$true] %s20_s26 }
   0x2   :  { %s1159_s27 = scalar_lea.vmem %s21_s26, 16  ;;  %p1164_p1 = scmp.lt.s32.totalorder %s21_s26, %s21_s26 }
   0x3   :  { %p1160_p0 = scmp.ne.s32.totalorder %s21_s26, %s1159_s27  ;;  %p1165_p2 = scmp.lt.s32.totalorder %s1159_s27, %s1159_s27 }
   0x5   :  { %p1166_p3 = por %p1165_p2, %p1164_p1 }
   0x7   :  { %p1167_p4 = pnand %p1166_p3, %p1160_p0 }
   0x9   :  { %1170 = shalt.err (!%p1167_p4)
}
   0xa   :  { %s1195_s28 = smov [#allocation4]  }
   0xb   :  { %23 = dma.vmem_to_smem %s21_s26, 16, %s1195_s28, [#allocation6]  }
   0xc   :  { %1191 = dma.done.wait [#allocation6], 16  }
   0xd   :  { %1192 = vsyncadd [#allocation6], 4294967280 }
   0xe   :  { %39 = sfence }
   0xf   :  { %v1248_v0 = vld [vmem:[%s1459_s3 + $0x8] sm:$0xff]   ;;  %v1196_v1 = vmov 0.0   ;;  %v1259_v3 = vld [vmem:[%s1459_s3] sm:$0xff]   ;;  %vm1197_vm0 = vmmov 0   ;;  %s41_s13 = sld [smem:[#allocation4]]  ;;  %v1198_v5 = vmov 0  }
  0x10   :  { %1006 = vmatprep.subr.bf16.mxu1 %v1196_v1  ;;  %998 = vmatprep.subr.bf16.mxu0 %v1196_v1  ;;  %v1086_v2 = vld [vmem:[%s1458_s2 + $0x8] sm:$0xff]   ;;  %v1088_v4 = vld [vmem:[%s1458_s2] sm:$0xff]   ;;  %s936_s14 = sld [smem:[#allocation4 + $0x1]]  ;;  %vm44_vm1 = vcmask 253952   ;;  %vm99_vm2 = vcmask 261120   ;;  %s1199_s18 = smov 64  }
  0x11   :  { %1007 = vmatpush3.bf16.msra.mxu1 %v1248_v0  ;;  %1010 = vmatprep.mubr.msk.bf16.mxu1 %vm1197_vm0, %v1196_v1  ;;  %s937_s3 = sld [smem:[#allocation4 + $0x2]]  ;;  %v943_v20 = vld [vmem:[%s1460_s4] ss:$0 sm:$0xff]  ;;  %s1200_s4 = smov 32   ;;  %vm400_vm3 = vcmask 256002   ;;  %vm572_vm4 = vcmask 258052  }
  0x12   :  { %1008 = vmatprep.subr.bf16.mxu1 %v1196_v1  ;;  %999 = vmatpush3.bf16.msra.mxu0 %v1086_v2  ;;  %s938_s15 = sld [smem:[#allocation4 + $0x3]]  ;;  %vm744_vm5 = vcmask 260102   ;;  %vm314_vm6 = vcmask 254977   ;;  %vm485_vm7 = vcmask 257027   ;;  %vm657_vm8 = vcmask 259077  }
  0x13   :  { %1000 = vmatprep.subr.bf16.mxu0 %v1196_v1  ;;  %1002 = vmatprep.mubr.msk.bf16.mxu0 %vm1197_vm0, %v1196_v1  ;;  %s939_s16 = sld [smem:[#allocation4 + $0x4]]  ;;  %vm829_vm9 = vcmask 261127   ;;  %vm899_vm10 = vcmask 64512  }
  0x14   :  { %s940_s2 = sld [smem:[#allocation4 + $0x5]] }
  0x15   :  { %1009 = vmatpush3.bf16.msra.mxu1 %v1259_v3  ;;  %s42_s19 = scalar_lea.vmem %s1457_s1, %s41_s13  ;;  %s941_s20 = sld [smem:[#allocation4 + $0x6]] }
  0x16   :  { %1001 = vmatpush3.bf16.msra.mxu0 %v1088_v4  ;;  %1022 = vmatprep.subr.bf16.mxu1 %v1196_v1  ;;  %v43_v6 = vld [vmem:[%s42_s19] sm:$0x1]  ;;  %s47_s23 = scalar_lea.vmem %s1457_s1, %s936_s14  ;;  %s942_s24 = sld [smem:[#allocation4 + $0x7]] }
  0x17   :  { %1014 = vmatprep.subr.bf16.mxu0 %v1196_v1  ;;  %45 = vst.msk [vmem:[#allocation2] sm:$0x1] %vm44_vm1, %v43_v6  ;;  %v48_v7 = vld [vmem:[%s47_s23] sm:$0x1]  ;;  %s51_s27 = scalar_lea.vmem %s1457_s1, %s937_s3 }
  0x18   :  { %1011 = vmatmul.mubr.bf16.vlgmr.msra.gmra.mxu1 %v1198_v5  ;;  %49 = vst.msk [vmem:[#allocation2 + $0x1] sm:$0x1] %vm44_vm1, %v48_v7  ;;  %v52_v8 = vld [vmem:[%s51_s27] sm:$0x1]  ;;  %s55_s30 = scalar_lea.vmem %s1457_s1, %s938_s15 }
  0x19   :  { %1023 = vmatpush3.bf16.msra.mxu1 %v1248_v0  ;;  %1026 = vmatprep.mubr.msk.bf16.mxu1 %vm1197_vm0, %v1196_v1  ;;  %53 = vst.msk [vmem:[#allocation2 + $0x2] sm:$0x1] %vm44_vm1, %v52_v8  ;;  %v56_v9 = vld [vmem:[%s55_s30] sm:$0x1]  ;;  %s59_s9 = scalar_lea.vmem %s1457_s1, %s939_s16 }
  0x1a   :  { %1024 = vmatprep.subr.bf16.mxu1 %v1196_v1  ;;  %57 = vst.msk [vmem:[#allocation2 + $0x3] sm:$0x1] %vm44_vm1, %v56_v9  ;;  %v60_v10 = vld [vmem:[%s59_s9] sm:$0x1]  ;;  %s63_s12 = scalar_lea.vmem %s1457_s1, %s940_s2 }
  0x1b   :  { %61 = vst.msk [vmem:[#allocation2 + $0x4] sm:$0x1] %vm44_vm1, %v60_v10  ;;  %v64_v11 = vld [vmem:[%s63_s12] sm:$0x1]  ;;  %s67_s3 = scalar_lea.vmem %s1457_s1, %s941_s20 }
  0x1c   :  { %65 = vst.msk [vmem:[#allocation2 + $0x5] sm:$0x1] %vm44_vm1, %v64_v11  ;;  %v68_v12 = vld [vmem:[%s67_s3] sm:$0x1]  ;;  %s71_s17 = scalar_lea.vmem %s1457_s1, %s942_s24 }
  0x1d   :  { %1025 = vmatpush3.bf16.msra.mxu1 %v1259_v3  ;;  %69 = vst.msk [vmem:[#allocation2 + $0x6] sm:$0x1] %vm44_vm1, %v68_v12  ;;  %v72_v13 = vld [vmem:[%s71_s17] sm:$0x1] }
  0x1e   :  { %1038 = vmatprep.subr.bf16.mxu1 %v1196_v1  ;;  %73 = vst.msk [vmem:[#allocation2 + $0x7] sm:$0x1] %vm44_vm1, %v72_v13 }
  0x25   :  { %v74_v14 = vld [vmem:[#allocation2] sm:$0xff] }
  0x26   :  { %v75_v15 = vpack.c.bf16 %v74_v14, %v74_v14 }
  0x28   :  { %1003 = vmatmul.mubr.msk.bf16.vlgmr.msra.gmra.mxu0 %vm99_vm2, %v75_v15 }
  0x29   :  { %1015 = vmatpush3.bf16.msra.mxu0 %v1248_v0  ;;  %1018 = vmatprep.mubr.msk.bf16.mxu0 %vm1197_vm0, %v1196_v1 }
  0x2a   :  { %1016 = vmatprep.subr.bf16.mxu0 %v1196_v1 }
  0x2d   :  { %1017 = vmatpush3.bf16.msra.mxu0 %v1259_v3 }
  0x2e   :  { %1030 = vmatprep.subr.bf16.mxu0 %v1196_v1 }
  0xd8   :  { %v196_v16 = vpop.f32.mrf.mxu1 }
  0xda   :  { %v1012_v17 = vpop.f32.mrf.mxu1 }
  0xdc   :  { %v199_v18 = vpop.f32.mrf.mxu1 }
  0xde   :  { %v1013_v19 = vpop.f32.mrf.mxu1 }
  0xe8   :  { %v137_v21 = vpop.f32.mrf.mxu0 }
  0xe9   :  { %v1321_v22 = vadd.f32 %v943_v20, %v137_v21 }
  0xea   :  { %v1004_v23 = vpop.f32.mrf.mxu0 }
  0xeb   :  { %v202_v24 = vadd.f32 %v196_v16, %v1321_v22 }
  0xec   :  { %v140_v25 = vpop.f32.mrf.mxu0 }
  0xed   :  { %1091 = vtanh.f32 %v202_v24  ;;  %v949_v28 = vmul.f32 -1.442695, %v202_v24 }
  0xee   :  { %v1005_v26 = vpop.f32.mrf.mxu0 }
  0xef   :  { %1093 = vpow2.f32 %v949_v28 }
  0xfa   :  { %v1092_v27 = vpop.eup %1091 }
  0xfb   :  { %212 = vrot.lane.b32.xlu0 %v1092_v27, %s1199_s18 }
  0xfc   :  { %v1094_v29 = vpop.eup %1093 }
  0xfd   :  { %v206_v30 = vadd.f32 1.0, %v1094_v29 }
  0xff   :  { %1095 = vrcp.f32 %v206_v30 }
 0x10c   :  { %v1096_v31 = vpop.eup %1095 }
 0x10d   :  { %v210_v34 = vmul.f32 0.0, %v1096_v31 }
 0x16d   :  { %v213_v32 = vpop.permute.xlu0 %212 }
 0x16e   :  { %v215_v33 = vmul.f32 %v1096_v31, %v213_v32 }
 0x170   :  { %217 = vrot.lane.b32.xlu0 %v215_v33, %s1200_s4 }
 0x1e2   :  { %v218_v35 = vpop.permute.xlu0 %217 }
 0x1e3   :  { %v220_v36 = vadd.f32 %v218_v35, %v210_v34 }
 0x1e5   :  { %1097 = vtanh.f32 %v220_v36  ;;  %v291_v55 = vrot.slane %v220_v36, 7 }
 0x1f2   :  { %v1098_v37 = vpop.eup %1097 }
 0x1f3   :  { %223 = vrot.lane.b32.xlu1 %v1098_v37, %s1199_s18 }
 0x265   :  { %v224_v38 = vpop.permute.xlu1 %223 }
 0x266   :  { %v1327_v39 = vmul.f32 %v1096_v31, %v224_v38 }
 0x268   :  { %v232_v40 = vpack.c.bf16 %v1327_v39, %v1327_v39 }
 0x26a   :  { %234 = vrot.lane.b32.xlu1 %v232_v40, %s1200_s4 }
 0x2dc   :  { %v235_v41 = vpop.permute.xlu1 %234 }
 0x2dd   :  { %1019 = vmatmul.mubr.msk.bf16.vlgmr.msra.gmra.mxu0 %vm99_vm2, %v235_v41 }
 0x2de   :  { %1031 = vmatpush3.bf16.msra.mxu0 %v1248_v0  ;;  %1034 = vmatprep.mubr.msk.bf16.mxu0 %vm1197_vm0, %v1196_v1 }
 0x2df   :  { %1032 = vmatprep.subr.bf16.mxu0 %v1196_v1 }
 0x2e2   :  { %1033 = vmatpush3.bf16.msra.mxu0 %v1259_v3 }
 0x2e3   :  { %1046 = vmatprep.subr.bf16.mxu0 %v1196_v1 }
 0x39d   :  { %v273_v42 = vpop.f32.mrf.mxu0 }
 0x39e   :  { %v280_v43 = vrot.slane %v273_v42, 7 }
 0x39f   :  { %v1020_v44 = vpop.f32.mrf.mxu0 }
 0x3a0   :  { %v282_v45 = vadd.f32 %v280_v43, %v1321_v22 }
 0x3a1   :  { %v276_v46 = vpop.f32.mrf.mxu0 }
 0x3a2   :  { %1099 = vtanh.f32 %v282_v45  ;;  %v951_v49 = vmul.f32 -1.442695, %v282_v45 }
 0x3a3   :  { %v1021_v47 = vpop.f32.mrf.mxu0 }
 0x3a4   :  { %1101 = vpow2.f32 %v951_v49 }
 0x3af   :  { %v1100_v48 = vpop.eup %1099 }
 0x3b0   :  { %295 = vrot.lane.b32.xlu0 %v1100_v48, %s1199_s18 }
 0x3b1   :  { %v1102_v50 = vpop.eup %1101 }
 0x3b2   :  { %v286_v51 = vadd.f32 1.0, %v1102_v50 }
 0x3b4   :  { %1103 = vrcp.f32 %v286_v51 }
 0x3c1   :  { %v1104_v52 = vpop.eup %1103 }
 0x3c2   :  { %v293_v56 = vmul.f32 %v1104_v52, %v291_v55 }
 0x422   :  { %v296_v53 = vpop.permute.xlu0 %295 }
 0x423   :  { %v298_v54 = vmul.f32 %v1104_v52, %v296_v53 }
 0x425   :  { %300 = vrot.lane.b32.xlu1 %v298_v54, %s1200_s4 }
 0x497   :  { %v301_v57 = vpop.permute.xlu1 %300 }
 0x498   :  { %v303_v58 = vadd.f32 %v301_v57, %v293_v56 }
 0x49a   :  { %1105 = vtanh.f32 %v303_v58  ;;  %v377_v17 = vrot.slane %v303_v58, 7 }
 0x4a7   :  { %v1106_v59 = vpop.eup %1105 }
 0x4a8   :  { %306 = vrot.lane.b32.xlu0 %v1106_v59, %s1199_s18 }
 0x51a   :  { %v307_v60 = vpop.permute.xlu0 %306 }
 0x51b   :  { %v1343_v61 = vmul.f32 %v1104_v52, %v307_v60 }
 0x51d   :  { %v316_v62 = vpack.c.bf16 %v1343_v61, %v1343_v61 }
 0x51f   :  { %v318_v63 = vshrl.u32 %v316_v62, 16 }
 0x521   :  { %320 = vrot.lane.b32.xlu1 %v318_v63, %s1200_s4 }
 0x593   :  { %v321_v2 = vpop.permute.xlu1 %320 }
 0x594   :  { %1027 = vmatmul.mubr.msk.bf16.vlgmr.msra.gmra.mxu1 %vm99_vm2, %v321_v2 }
 0x595   :  { %1039 = vmatpush3.bf16.msra.mxu1 %v1248_v0  ;;  %1042 = vmatprep.mubr.msk.bf16.mxu1 %vm1197_vm0, %v1196_v1 }
 0x596   :  { %1040 = vmatprep.subr.bf16.mxu1 %v1196_v1 }
 0x599   :  { %1041 = vmatpush3.bf16.msra.mxu1 %v1259_v3 }
 0x59a   :  { %1054 = vmatprep.subr.bf16.mxu1 %v1196_v1 }
 0x654   :  { %v359_v4 = vpop.f32.mrf.mxu1 }
 0x655   :  { %v366_v5 = vrot.slane %v359_v4, 6 }
 0x656   :  { %v1028_v6 = vpop.f32.mrf.mxu1 }
 0x657   :  { %v368_v7 = vadd.f32 %v366_v5, %v1321_v22 }
 0x658   :  { %v362_v8 = vpop.f32.mrf.mxu1 }
 0x659   :  { %1107 = vtanh.f32 %v368_v7  ;;  %v953_v11 = vmul.f32 -1.442695, %v368_v7 }
 0x65a   :  { %v1029_v9 = vpop.f32.mrf.mxu1 }
 0x65b   :  { %1109 = vpow2.f32 %v953_v11 }
 0x666   :  { %v1108_v10 = vpop.eup %1107 }
 0x667   :  { %381 = vrot.lane.b32.xlu0 %v1108_v10, %s1199_s18 }
 0x668   :  { %v1110_v12 = vpop.eup %1109 }
 0x669   :  { %v372_v13 = vadd.f32 1.0, %v1110_v12 }
 0x66b   :  { %1111 = vrcp.f32 %v372_v13 }
 0x678   :  { %v1112_v14 = vpop.eup %1111 }
 0x679   :  { %v379_v18 = vmul.f32 %v1112_v14, %v377_v17 }
 0x6d9   :  { %v382_v15 = vpop.permute.xlu0 %381 }
 0x6da   :  { %v384_v16 = vmul.f32 %v1112_v14, %v382_v15 }
 0x6dc   :  { %386 = vrot.lane.b32.xlu1 %v384_v16, %s1200_s4 }
 0x74e   :  { %v387_v19 = vpop.permute.xlu1 %386 }
 0x74f   :  { %v389_v20 = vadd.f32 %v387_v19, %v379_v18 }
 0x751   :  { %1113 = vtanh.f32 %v389_v20  ;;  %v462_v42 = vrot.slane %v389_v20, 7 }
 0x75e   :  { %v1114_v21 = vpop.eup %1113 }
 0x75f   :  { %392 = vrot.lane.b32.xlu0 %v1114_v21, %s1199_s18 }
 0x7d1   :  { %v393_v23 = vpop.permute.xlu0 %392 }
 0x7d2   :  { %v1359_v24 = vmul.f32 %v1112_v14, %v393_v23 }
 0x7d4   :  { %v402_v25 = vpack.c.bf16 %v1359_v24, %v1359_v24 }
 0x7d6   :  { %v404_v26 = vrot.slane %v402_v25, 1 }
 0x7d8   :  { %405 = vrot.lane.b32.xlu1 %v404_v26, %s1200_s4 }
 0x84a   :  { %v406_v27 = vpop.permute.xlu1 %405 }
 0x84b   :  { %1035 = vmatmul.mubr.msk.bf16.vlgmr.msra.gmra.mxu0 %vm99_vm2, %v406_v27 }
 0x84c   :  { %1047 = vmatpush3.bf16.msra.mxu0 %v1248_v0  ;;  %1050 = vmatprep.mubr.msk.bf16.mxu0 %vm1197_vm0, %v1196_v1 }
 0x84d   :  { %1048 = vmatprep.subr.bf16.mxu0 %v1196_v1 }
 0x850   :  { %1049 = vmatpush3.bf16.msra.mxu0 %v1259_v3 }
 0x851   :  { %1062 = vmatprep.subr.bf16.mxu0 %v1196_v1 }
 0x90b   :  { %v444_v28 = vpop.f32.mrf.mxu0 }
 0x90c   :  { %v451_v29 = vrot.slane %v444_v28, 5 }
 0x90d   :  { %v1036_v30 = vpop.f32.mrf.mxu0 }
 0x90e   :  { %v453_v31 = vadd.f32 %v451_v29, %v1321_v22 }
 0x90f   :  { %v447_v32 = vpop.f32.mrf.mxu0 }
 0x910   :  { %1115 = vtanh.f32 %v453_v31  ;;  %v955_v35 = vmul.f32 -1.442695, %v453_v31 }
 0x911   :  { %v1037_v33 = vpop.f32.mrf.mxu0 }
 0x912   :  { %1117 = vpow2.f32 %v955_v35 }
 0x91d   :  { %v1116_v34 = vpop.eup %1115 }
 0x91e   :  { %466 = vrot.lane.b32.xlu0 %v1116_v34, %s1199_s18 }
 0x91f   :  { %v1118_v36 = vpop.eup %1117 }
 0x920   :  { %v457_v37 = vadd.f32 1.0, %v1118_v36 }
 0x922   :  { %1119 = vrcp.f32 %v457_v37 }
 0x92f   :  { %v1120_v38 = vpop.eup %1119 }
 0x930   :  { %v464_v43 = vmul.f32 %v1120_v38, %v462_v42 }
 0x990   :  { %v467_v40 = vpop.permute.xlu0 %466 }
 0x991   :  { %v469_v41 = vmul.f32 %v1120_v38, %v467_v40 }
 0x993   :  { %471 = vrot.lane.b32.xlu1 %v469_v41, %s1200_s4 }
 0xa05   :  { %v472_v44 = vpop.permute.xlu1 %471 }
 0xa06   :  { %v474_v45 = vadd.f32 %v472_v44, %v464_v43 }
 0xa08   :  { %1121 = vtanh.f32 %v474_v45  ;;  %v549_v6 = vrot.slane %v474_v45, 7 }
 0xa15   :  { %v1122_v46 = vpop.eup %1121 }
 0xa16   :  { %477 = vrot.lane.b32.xlu0 %v1122_v46, %s1199_s18 }
 0xa88   :  { %v478_v47 = vpop.permute.xlu0 %477 }
 0xa89   :  { %v1375_v48 = vmul.f32 %v1120_v38, %v478_v47 }
 0xa8b   :  { %v487_v49 = vpack.c.bf16 %v1375_v48, %v1375_v48 }
 0xa8d   :  { %v489_v50 = vshrl.u32 %v487_v49, 16 }
 0xa8f   :  { %v491_v51 = vrot.slane %v489_v50, 1 }
 0xa91   :  { %492 = vrot.lane.b32.xlu1 %v491_v51, %s1200_s4 }
 0xb03   :  { %v493_v52 = vpop.permute.xlu1 %492 }
 0xb04   :  { %1043 = vmatmul.mubr.msk.bf16.vlgmr.msra.gmra.mxu1 %vm99_vm2, %v493_v52 }
 0xb05   :  { %1055 = vmatpush3.bf16.msra.mxu1 %v1248_v0  ;;  %1058 = vmatprep.mubr.msk.bf16.mxu1 %vm1197_vm0, %v1196_v1 }
 0xb06   :  { %1056 = vmatprep.subr.bf16.mxu1 %v1196_v1 }
 0xb09   :  { %1057 = vmatpush3.bf16.msra.mxu1 %v1259_v3 }
 0xb0a   :  { %1070 = vmatprep.subr.bf16.mxu1 %v1196_v1 }
 0xbc4   :  { %v531_v53 = vpop.f32.mrf.mxu1 }
 0xbc5   :  { %v538_v54 = vrot.slane %v531_v53, 4 }
 0xbc6   :  { %v1044_v55 = vpop.f32.mrf.mxu1 }
 0xbc7   :  { %v540_v56 = vadd.f32 %v538_v54, %v1321_v22 }
 0xbc8   :  { %v534_v57 = vpop.f32.mrf.mxu1 }
 0xbc9   :  { %1123 = vtanh.f32 %v540_v56  ;;  %v957_v60 = vmul.f32 -1.442695, %v540_v56 }
 0xbca   :  { %v1045_v58 = vpop.f32.mrf.mxu1 }
 0xbcb   :  { %1125 = vpow2.f32 %v957_v60 }
 0xbd6   :  { %v1124_v59 = vpop.eup %1123 }
 0xbd7   :  { %553 = vrot.lane.b32.xlu0 %v1124_v59, %s1199_s18 }
 0xbd8   :  { %v1126_v62 = vpop.eup %1125 }
 0xbd9   :  { %v544_v63 = vadd.f32 1.0, %v1126_v62 }
 0xbdb   :  { %1127 = vrcp.f32 %v544_v63 }
 0xbe8   :  { %v1128_v2 = vpop.eup %1127 }
 0xbe9   :  { %v551_v7 = vmul.f32 %v1128_v2, %v549_v6 }
 0xc49   :  { %v554_v4 = vpop.permute.xlu0 %553 }
 0xc4a   :  { %v556_v5 = vmul.f32 %v1128_v2, %v554_v4 }
 0xc4c   :  { %558 = vrot.lane.b32.xlu1 %v556_v5, %s1200_s4 }
 0xcbe   :  { %v559_v8 = vpop.permute.xlu1 %558 }
 0xcbf   :  { %v561_v9 = vadd.f32 %v559_v8, %v551_v7 }
 0xcc1   :  { %1129 = vtanh.f32 %v561_v9 }
 0xcce   :  { %v1130_v10 = vpop.eup %1129 }
 0xccf   :  { %564 = vrot.lane.b32.xlu0 %v1130_v10, %s1199_s18 }
 0xd41   :  { %v565_v11 = vpop.permute.xlu0 %564 }
 0xd42   :  { %v1391_v12 = vmul.f32 %v1128_v2, %v565_v11 }
 0xd44   :  { %v574_v13 = vpack.c.bf16 %v1391_v12, %v1391_v12 }
 0xd46   :  { %v576_v14 = vrot.slane %v574_v13, 2 }
 0xd48   :  { %577 = vrot.lane.b32.xlu1 %v576_v14, %s1200_s4 }
 0xdba   :  { %v578_v15 = vpop.permute.xlu1 %577 }
 0xdbb   :  { %1051 = vmatmul.mubr.msk.bf16.vlgmr.msra.gmra.mxu0 %vm99_vm2, %v578_v15 }
 0xdbc   :  { %1063 = vmatpush3.bf16.msra.mxu0 %v1248_v0  ;;  %1066 = vmatprep.mubr.msk.bf16.mxu0 %vm1197_vm0, %v1196_v1 }
 0xdbd   :  { %1064 = vmatprep.subr.bf16.mxu0 %v1196_v1 }
 0xdc0   :  { %1065 = vmatpush3.bf16.msra.mxu0 %v1259_v3  ;;  %v634_v3 = vrot.slane %v561_v9, 7 }
 0xe7b   :  { %v616_v16 = vpop.f32.mrf.mxu0 }
 0xe7c   :  { %v623_v17 = vrot.slane %v616_v16, 3 }
 0xe7d   :  { %v1052_v18 = vpop.f32.mrf.mxu0 }
 0xe7e   :  { %v625_v19 = vadd.f32 %v623_v17, %v1321_v22 }
 0xe7f   :  { %v619_v20 = vpop.f32.mrf.mxu0 }
 0xe80   :  { %1131 = vtanh.f32 %v625_v19  ;;  %v959_v25 = vmul.f32 -1.442695, %v625_v19 }
 0xe81   :  { %v1053_v21 = vpop.f32.mrf.mxu0 }
 0xe82   :  { %1133 = vpow2.f32 %v959_v25 }
 0xe8d   :  { %v1132_v23 = vpop.eup %1131 }
 0xe8e   :  { %638 = vrot.lane.b32.xlu0 %v1132_v23, %s1199_s18 }
 0xe8f   :  { %v1134_v0 = vpop.eup %1133 }
 0xe90   :  { %v629_v26 = vadd.f32 1.0, %v1134_v0 }
 0xe92   :  { %1135 = vrcp.f32 %v629_v26  ;;  %v1090_v26 = vld [vmem:[%s1461_s5] sm:$0xff]  }
 0xe9f   :  { %v1136_v27 = vpop.eup %1135 }
 0xea0   :  { %v636_v30 = vmul.f32 %v1136_v27, %v634_v3 }
 0xf00   :  { %v639_v28 = vpop.permute.xlu0 %638 }
 0xf01   :  { %v641_v29 = vmul.f32 %v1136_v27, %v639_v28 }
 0xf03   :  { %643 = vrot.lane.b32.xlu1 %v641_v29, %s1200_s4 }
 0xf75   :  { %v644_v31 = vpop.permute.xlu1 %643 }
 0xf76   :  { %v646_v32 = vadd.f32 %v644_v31, %v636_v30 }
 0xf78   :  { %1137 = vtanh.f32 %v646_v32  ;;  %v721_v55 = vrot.slane %v646_v32, 7 }
 0xf85   :  { %v1138_v33 = vpop.eup %1137 }
 0xf86   :  { %649 = vrot.lane.b32.xlu0 %v1138_v33, %s1199_s18 }
 0xff8   :  { %v650_v34 = vpop.permute.xlu0 %649 }
 0xff9   :  { %v1406_v35 = vmul.f32 %v1136_v27, %v650_v34 }
 0xffb   :  { %v659_v36 = vpack.c.bf16 %v1406_v35, %v1406_v35 }
 0xffd   :  { %v661_v37 = vshrl.u32 %v659_v36, 16 }
 0xfff   :  { %v663_v38 = vrot.slane %v661_v37, 2 }
0x1001   :  { %664 = vrot.lane.b32.xlu1 %v663_v38, %s1200_s4 }
0x1073   :  { %v665_v40 = vpop.permute.xlu1 %664 }
0x1074   :  { %1059 = vmatmul.mubr.msk.bf16.vlgmr.msra.gmra.mxu1 %vm99_vm2, %v665_v40 }
0x1075   :  { %1074 = vmatprep.mubr.msk.bf16.mxu1 %vm1197_vm0, %v1196_v1 }
0x1134   :  { %v703_v41 = vpop.f32.mrf.mxu1 }
0x1135   :  { %v710_v42 = vrot.slane %v703_v41, 2 }
0x1136   :  { %v1060_v43 = vpop.f32.mrf.mxu1 }
0x1137   :  { %v712_v44 = vadd.f32 %v710_v42, %v1321_v22 }
0x1138   :  { %v706_v45 = vpop.f32.mrf.mxu1 }
0x1139   :  { %1139 = vtanh.f32 %v712_v44  ;;  %v961_v49 = vmul.f32 -1.442695, %v712_v44 }
0x113a   :  { %v1061_v46 = vpop.f32.mrf.mxu1 }
0x113b   :  { %1141 = vpow2.f32 %v961_v49 }
0x1146   :  { %v1140_v47 = vpop.eup %1139 }
0x1147   :  { %725 = vrot.lane.b32.xlu0 %v1140_v47, %s1199_s18 }
0x1148   :  { %v1142_v50 = vpop.eup %1141 }
0x1149   :  { %v716_v51 = vadd.f32 1.0, %v1142_v50 }
0x114b   :  { %1143 = vrcp.f32 %v716_v51 }
0x1158   :  { %v1144_v52 = vpop.eup %1143 }
0x1159   :  { %v723_v56 = vmul.f32 %v1144_v52, %v721_v55 }
0x11b9   :  { %v726_v53 = vpop.permute.xlu0 %725 }
0x11ba   :  { %v728_v54 = vmul.f32 %v1144_v52, %v726_v53 }
0x11bc   :  { %730 = vrot.lane.b32.xlu1 %v728_v54, %s1200_s4 }
0x122e   :  { %v731_v57 = vpop.permute.xlu1 %730 }
0x122f   :  { %v733_v58 = vadd.f32 %v731_v57, %v723_v56 }
0x1231   :  { %1145 = vtanh.f32 %v733_v58 }
0x123e   :  { %v1146_v59 = vpop.eup %1145 }
0x123f   :  { %736 = vrot.lane.b32.xlu0 %v1146_v59, %s1199_s18 }
0x12b1   :  { %v737_v60 = vpop.permute.xlu0 %736 }
0x12b2   :  { %v739_v62 = vmul.f32 %v1144_v52, %v737_v60 }
0x12b4   :  { %v746_v63 = vpack.c.bf16 %v739_v62, %v739_v62 }
0x12b6   :  { %v748_v2 = vrot.slane %v746_v63, 3 }
0x12b8   :  { %749 = vrot.lane.b32.xlu1 %v748_v2, %s1200_s4 }
0x132a   :  { %v750_v4 = vpop.permute.xlu1 %749 }
0x132b   :  { %1067 = vmatmul.mubr.msk.bf16.vlgmr.msra.gmra.mxu0 %vm99_vm2, %v750_v4 }
0x13eb   :  { %v788_v5 = vpop.f32.mrf.mxu0 }
0x13ec   :  { %v795_v6 = vrot.slane %v788_v5, 1 }
0x13ed   :  { %v1068_v7 = vpop.f32.mrf.mxu0 }
0x13ee   :  { %v797_v8 = vadd.f32 %v795_v6, %v1321_v22  ;;  %v806_v22 = vrot.slane %v733_v58, 7 }
0x13ef   :  { %v791_v9 = vpop.f32.mrf.mxu0 }
0x13f0   :  { %1147 = vtanh.f32 %v797_v8  ;;  %v963_v13 = vmul.f32 -1.442695, %v797_v8 }
0x13f1   :  { %v1069_v10 = vpop.f32.mrf.mxu0 }
0x13f2   :  { %1149 = vpow2.f32 %v963_v13 }
0x13fd   :  { %v1148_v11 = vpop.eup %1147 }
0x13fe   :  { %810 = vrot.lane.b32.xlu0 %v1148_v11, %s1199_s18 }
0x13ff   :  { %v1150_v14 = vpop.eup %1149 }
0x1400   :  { %v801_v15 = vadd.f32 1.0, %v1150_v14 }
0x1402   :  { %1151 = vrcp.f32 %v801_v15 }
0x140f   :  { %v1152_v16 = vpop.eup %1151 }
0x1410   :  { %v808_v19 = vmul.f32 %v1152_v16, %v806_v22 }
0x1470   :  { %v811_v17 = vpop.permute.xlu0 %810 }
0x1471   :  { %v813_v18 = vmul.f32 %v1152_v16, %v811_v17 }
0x1473   :  { %815 = vrot.lane.b32.xlu1 %v813_v18, %s1200_s4 }
0x1477   :  { %228 = vrot.lane.b32.xlu1 %v1327_v39, %s1200_s4 }
0x147b   :  { %397 = vrot.lane.b32.xlu1 %v1359_v24, %s1200_s4 }
0x147f   :  { %569 = vrot.lane.b32.xlu1 %v1391_v12, %s1200_s4  ;;  %v1089_v12 = vld [vmem:[%s1461_s5 + $0x8] sm:$0xff]  }
0x1480   :  { %1071 = vmatpush3.bf16.msra.mxu1 %v1089_v12 }
0x1481   :  { %1072 = vmatprep.subr.bf16.mxu1 %v1196_v1  ;;  %v964_v1 = vld [vmem:[%s1462_s6] ss:$0 sm:$0xff]  ;;  %s1201_s6 = smov [#allocation7]  }
0x1482   :  { %s919_s24 = sshll.u32 %s1201_s6, 4  ;;  %s920_s24 = int_to_ptr.vmem [resolvable:$true] %s919_s24 }
0x1483   :  { %741 = vrot.lane.b32.xlu1 %v739_v62, %s1200_s4  ;;  %s1171_s25 = scalar_lea.vmem %s920_s24, 128  ;;  %p1176_p6 = scmp.lt.s32.totalorder %s920_s24, %s920_s24 }
0x1484   :  { %1073 = vmatpush3.bf16.msra.mxu1 %v1090_v26  ;;  %p1172_p5 = scmp.ne.s32.totalorder %s920_s24, %s1171_s25  ;;  %p1177_p7 = scmp.lt.s32.totalorder %s1171_s25, %s1171_s25 }
0x1486   :  { %p1178_p8 = por %p1177_p7, %p1176_p6 }
0x1488   :  { %p1179_p9 = pnand %p1178_p8, %p1172_p5 }
0x14e5   :  { %v816_v20 = vpop.permute.xlu1 %815 }
0x14e6   :  { %v818_v21 = vadd.f32 %v816_v20, %v808_v19 }
0x14e8   :  { %1153 = vtanh.f32 %v818_v21 }
0x14e9   :  { %v229_v23 = vpop.permute.xlu1 %228 }
0x14ea   :  { %231 = vst.msk [vmem:[#allocation3] sm:$0x1] %vm44_vm1, %v229_v23 }
0x14ed   :  { %v398_v25 = vpop.permute.xlu1 %397 }
0x14ee   :  { %401 = vst.msk [vmem:[#allocation3] sm:$0x4] %vm400_vm3, %v398_v25 }
0x14f1   :  { %v570_v39 = vpop.permute.xlu1 %569 }
0x14f2   :  { %573 = vst.msk [vmem:[#allocation3] sm:$0x10] %vm572_vm4, %v570_v39 }
0x14f5   :  { %v1154_v24 = vpop.eup %1153  ;;  %v742_v0 = vpop.permute.xlu1 %741 }
0x14f6   :  { %745 = vst.msk [vmem:[#allocation3] sm:$0x40] %vm744_vm5, %v742_v0  ;;  %821 = vrot.lane.b32.xlu0 %v1154_v24, %s1199_s18 }
0x14fa   :  { %311 = vrot.lane.b32.xlu0 %v1343_v61, %s1200_s4 }
0x14fe   :  { %482 = vrot.lane.b32.xlu0 %v1375_v48, %s1200_s4 }
0x1502   :  { %654 = vrot.lane.b32.xlu0 %v1406_v35, %s1200_s4 }
0x1568   :  { %v822_v27 = vpop.permute.xlu0 %821 }
0x1569   :  { %v824_v61 = vmul.f32 %v1152_v16, %v822_v27 }
0x156b   :  { %826 = vrot.lane.b32.xlu0 %v824_v61, %s1200_s4 }
0x156c   :  { %v312_v48 = vpop.permute.xlu0 %311 }
0x156d   :  { %315 = vst.msk [vmem:[#allocation3] sm:$0x2] %vm314_vm6, %v312_v48 }
0x1570   :  { %v483_v28 = vpop.permute.xlu0 %482 }
0x1571   :  { %486 = vst.msk [vmem:[#allocation3] sm:$0x8] %vm485_vm7, %v483_v28 }
0x1574   :  { %v655_v29 = vpop.permute.xlu0 %654 }
0x1575   :  { %658 = vst.msk [vmem:[#allocation3] sm:$0x20] %vm657_vm8, %v655_v29 }
0x15dd   :  { %v827_v3 = vpop.permute.xlu0 %826 }
0x15de   :  { %830 = vst.msk [vmem:[#allocation3] sm:$0x80] %vm829_vm9, %v827_v3 }
0x15e5   :  { %v831_v30 = vld [vmem:[#allocation3] sm:$0xff] }
0x15e6   :  { %v832_v31 = vpack.c.bf16 %v831_v30, %v831_v30 }
0x15e8   :  { %1075 = vmatmul.mubr.msk.bf16.vlgmr.msra.gmra.mxu1 %vm99_vm2, %v832_v31 }
0x16a8   :  { %v893_v32 = vpop.f32.mrf.mxu1 }
0x16a9   :  { %v894_v33 = vadd.f32 %v964_v1, %v893_v32 }
0x16aa   :  { %v1076_v34 = vpop.f32.mrf.mxu1 }
0x16ab   :  { %v900_v35 = vsel %vm899_vm10, %v894_v33, -inf }
0x16ac   :  { %901 = vmax.xlane.f32.xlu1 %v900_v35  ;;  %v896_v36 = vpop.f32.mrf.mxu1 }
0x16ae   :  { %v1077_v37 = vpop.f32.mrf.mxu1 }
0x1735   :  { %v902_v38 = vpop.xlane.xlu1 %901 }
0x1736   :  { %v903_v40 = vsub.f32 %v894_v33, %v902_v38 }
0x1738   :  { %v904_v41 = vmul.f32 1.442695, %v903_v40 }
0x173a   :  { %1155 = vpow2.f32 %v904_v41 }
0x1747   :  { %v1156_v42 = vpop.eup %1155 }
0x1748   :  { %v906_v43 = vsel %vm899_vm10, %v1156_v42, 0.0 }
0x1749   :  { %907 = vadd.xlane.f32.xlu0 %v906_v43 }
0x17d2   :  { %v908_v44 = vpop.xlane.xlu0 %907 }
0x17d3   :  { %1157 = vlog2.f32 %v908_v44 }
0x17e0   :  { %v1158_v45 = vpop.eup %1157 }
0x17e1   :  { %v910_v46 = vmul.f32 0.6931472, %v1158_v45 }
0x17e3   :  { %v911_v47 = vsub.f32 %v903_v40, %v910_v46 }
0x17e5   :  { %912 = vst.msk [vmem:[#allocation7] sm:$0xff] %vm899_vm10, %v911_v47 }
0x17e6   :  { %1182 = shalt.err (!%p1179_p9)
}
0x17e7   :  { %922 = dma.vmem_to_hbm [thread:$0]  %s920_s24, 128, %s1463_s7, [#allocation5]  }
0x17e8   :  { %1193 = dma.done.wait [#allocation5], 128  }
0x17e9   :  { %1194 = vsyncadd [#allocation5], 4294967168 }
0x17ea   :  { %926 = vsyncpa [#allocation5], 1 }
0x17eb   :  { %927 = vsyncpa [#allocation6], 1 }

</bundles_post_ra>
